<compile_context>
chip_gen: v7x
topology: tpu7x:2x2x1
jax: 0.10.0
libtpu: 0.0.40
codegen_flags: <defaults>
</compile_context>

<pallas_src>
import functools

import jax
import jax.numpy as jnp
from jax.experimental import pallas as pl
from jax.experimental.pallas import tpu as pltpu


def _seg_kernel(x_ref, halo_ref, w1t_ref, b1_ref, w2_ref, b2_ref, o_ref,
                ext_ref, taps_ref, *, tap_offsets, cin, rblk, k9, k9p, cout):
    # x_ref   : (Cin, RBLK)          bf16  lane-dense block of the flattened,
    #                                      zero-padded, channel-major image
    # halo_ref: (Cin, HALO_PAD)      bf16  right halo (next HALO_PAD elements)
    # w1t_ref : (Cmid, K9P)          bf16  3x3 weights, (kh,kw,cin)-major, K zero-padded
    # b1_ref  : (Cmid, 1)            f32
    # w2_ref  : (Cmid, Cout)         f32
    # b2_ref  : (Cout, 1)            f32
    # o_ref   : (Cout, RBLK)         f32   lane-dense output block
    # ext_ref : (Cin, RBLK+HALO_PAD) bf16  scratch: block + halo, contiguous
    # taps_ref: (K9P, RBLK)          f32   scratch: in-kernel "im2col" block
    ext_ref[:, :rblk] = x_ref[...]
    ext_ref[:, rblk:] = halo_ref[...]

    # Form the nine shifted taps (in-kernel halo handling, no HBM im2col).
    for d, off in enumerate(tap_offsets):
        taps_ref[d * cin:(d + 1) * cin, :] = (
            ext_ref[:, off:off + rblk].astype(jnp.float32))
    if k9p > k9:  # zero the padded contraction rows (paired with zero weight cols)
        taps_ref[k9:, :] = jnp.zeros((k9p - k9, rblk), jnp.float32)

    # 3x3 conv == one MXU contraction over K = 9*Cin, bf16 operands, f32 acc.
    h = jnp.dot(w1t_ref[...], taps_ref[...].astype(jnp.bfloat16),
                preferred_element_type=jnp.float32)
    h = jnp.maximum(h + b1_ref[...], 0.0)                       # bias + ReLU (f32)

    # 1x1 conv: for Cout == 1 a VPU multiply + sublane reduce beats a
    # 1-row MXU matmul; otherwise contract over Cmid on the MXU.
    if cout == 1:
        y = jnp.sum(h * w2_ref[...], axis=0, keepdims=True)      # (1, RBLK)
    else:
        y = jax.lax.dot_general(w2_ref[...], h, (((0,), (0,)), ((), ())))
    o_ref[...] = jax.nn.sigmoid(y + b2_ref[...]).astype(o_ref.dtype)


def _round_up(x, m):
    return ((x + m - 1) // m) * m


def _choose_rblk(total, halo_pad):
    # Largest power-of-two multiple of halo_pad (<= 16384) that still leaves
    # at least 2 grid steps (so both v7x TensorCores get work).
    best = halo_pad
    cand = halo_pad * 2
    while cand <= 16384 and total >= 2 * cand:
        best = cand
        cand *= 2
    return best


def simple_segmentation_forward(x_nchw, w1, b1, w2, b2):
    """x_nchw: (N, Cin, H, W) f32; w1: (3,3,Cin,Cmid) HWIO; b1: (Cmid,);
    w2: (Cmid, Cout); b2: (Cout,).  Returns (N, Cout, H, W) f32."""
    N, Cin, H, W = x_nchw.shape
    Cmid = w1.shape[3]
    Cout = w2.shape[1]

    Hp, Wp = H + 2, W + 2
    L = Hp * Wp                          # padded pixels per image
    total = N * L                        # flat lane-dense pixel axis

    # Tap offsets in the flattened padded image: (kh, kw) -> kh*Wp + kw.
    tap_offsets = tuple(kh * Wp + kw for kh in range(3) for kw in range(3))
    halo = tap_offsets[-1]               # 2*Wp + 2
    HALO_PAD = _round_up(max(halo, 1), 128)

    RBLK = _choose_rblk(total, HALO_PAD)
    grid = -(-total // RBLK)
    if grid > 1 and grid % 2 == 1:       # even grid -> balanced v7x megacore split
        grid += 1
    Rpad = grid * RBLK

    # Wrapper glue (cheap; no 9x im2col, no big transpose of patches):
    # zero-pad the halo ring, go channel-major, flatten, cast stream to bf16.
    x_pad = jnp.pad(x_nchw, ((0, 0), (0, 0), (1, 1), (1, 1)))         # (N,Cin,Hp,Wp)
    x_flat = jnp.transpose(x_pad, (1, 0, 2, 3)).reshape(Cin, total)   # (Cin, N*L)
    x_flat = jnp.pad(x_flat, ((0, 0), (0, Rpad + HALO_PAD - total)))
    x_flat = x_flat.astype(jnp.bfloat16)

    K9 = 9 * Cin
    K9P = _round_up(K9, 16)              # bf16 sublane tile for the contraction
    w1t = jnp.pad(w1.reshape(K9, Cmid).T, ((0, 0), (0, K9P - K9)))    # (Cmid, K9P)
    w1t = w1t.astype(jnp.bfloat16)
    b1_2d = b1.reshape(Cmid, 1).astype(jnp.float32)
    w2_2d = w2.reshape(Cmid, Cout).astype(jnp.float32)
    b2_2d = b2.reshape(Cout, 1).astype(jnp.float32)

    kernel = functools.partial(
        _seg_kernel, tap_offsets=tap_offsets, cin=Cin, rblk=RBLK,
        k9=K9, k9p=K9P, cout=Cout)

    out_flat = pl.pallas_call(
        kernel,
        out_shape=jax.ShapeDtypeStruct((Cout, Rpad), jnp.float32),
        grid=(grid,),
        in_specs=[
            # main lane-dense block of the flattened padded image
            pl.BlockSpec((Cin, RBLK), lambda r: (0, r)),
            # right halo: the HALO_PAD elements immediately after the block
            pl.BlockSpec((Cin, HALO_PAD),
                         lambda r: (0, (r + 1) * (RBLK // HALO_PAD))),
            pl.BlockSpec((Cmid, K9P), lambda r: (0, 0)),
            pl.BlockSpec((Cmid, 1), lambda r: (0, 0)),
            pl.BlockSpec((Cmid, Cout), lambda r: (0, 0)),
            pl.BlockSpec((Cout, 1), lambda r: (0, 0)),
        ],
        out_specs=pl.BlockSpec((Cout, RBLK), lambda r: (0, r)),
        scratch_shapes=[
            pltpu.VMEM((Cin, RBLK + HALO_PAD), jnp.bfloat16),
            pltpu.VMEM((K9P, RBLK), jnp.float32),
        ],
        compiler_params=pltpu.CompilerParams(
            dimension_semantics=("parallel",)),
    )(x_flat, x_flat, w1t, b1_2d, w2_2d, b2_2d)

    # (Cout, Rpad) -> valid pixels -> NCHW.
    out = out_flat[:, :total].reshape(Cout, N, Hp, Wp)[:, :, :H, :W]
    return jnp.transpose(out, (1, 0, 2, 3))


def _reference_forward(x_nchw, w1, b1, w2, b2):
    """Pure-JAX reference (lax.conv) for correctness checking."""
    x = jnp.transpose(x_nchw, (0, 2, 3, 1))  # NHWC
    y = jax.lax.conv_general_dilated(
        x, w1, window_strides=(1, 1), padding="SAME",
        dimension_numbers=("NHWC", "HWIO", "NHWC"))
    y = jax.nn.relu(y + b1)
    y = jnp.einsum("nhwc,co->nhwo", y, w2) + b2
    y = jax.nn.sigmoid(y)
    return jnp.transpose(y, (0, 3, 1, 2))


if __name__ == "__main__":
    # Module hyperparameters (defaults of SimpleSegmentationModel).
    in_channels, out_channels, hidden = 1, 1, 16
    N, H, W = 2, 16, 16

    key = jax.random.PRNGKey(0)
    kx, kw1, kb1, kw2, kb2 = jax.random.split(key, 5)

    x = jax.random.normal(kx, (N, in_channels, H, W), dtype=jnp.float32)
    w1 = jax.random.normal(kw1, (3, 3, in_channels, hidden), jnp.float32) * 0.3  # HWIO
    b1 = jax.random.normal(kb1, (hidden,), jnp.float32) * 0.1
    w2 = jax.random.normal(kw2, (hidden, out_channels), jnp.float32) * 0.3
    b2 = jax.random.normal(kb2, (out_channels,), jnp.float32) * 0.1

    out = jax.block_until_ready(simple_segmentation_forward(x, w1, b1, w2, b2))
    ref = jax.block_until_ready(_reference_forward(x, w1, b1, w2, b2))

    assert out.shape == (N, out_channels, H, W), out.shape
    max_err = float(jnp.max(jnp.abs(out - ref)))
    # bf16 MXU operands -> tolerance looser than the pure-f32 version.
    assert max_err < 3e-2, max_err

    print("KERNEL_OK")
</pallas_src>

<mosaic_0001>
module attributes {stable_mosaic.version = 11 : i64} {
  func.func @_seg_kernel(%arg0: i32, %arg1: memref<1x256xbf16, #tpu.memory_space<vmem>>, %arg2: memref<1x128xbf16, #tpu.memory_space<vmem>>, %arg3: memref<16x16xbf16, #tpu.memory_space<vmem>>, %arg4: memref<16x1xf32, #tpu.memory_space<vmem>>, %arg5: memref<16x1xf32, #tpu.memory_space<vmem>>, %arg6: memref<1x1xf32, #tpu.memory_space<vmem>>, %arg7: memref<1x256xf32, #tpu.memory_space<vmem>>, %arg8: memref<1x384xbf16, #tpu.memory_space<vmem>>, %arg9: memref<16x256xf32, #tpu.memory_space<vmem>>) attributes {dimension_semantics = [#tpu.dimension_semantics<parallel>], iteration_bounds = array<i64: 4>, scalar_prefetch = 0 : i64, scratch_operands = 2 : i64, tpu.core_type = #tpu.core_type<tc>, window_params = [{transform_indices = @transform_0, window_bounds = array<i64: 1, 256>}, {transform_indices = @transform_1, window_bounds = array<i64: 1, 128>}, {pipeline_mode = #tpu.pipeline_mode<synchronous>, transform_indices = @transform_2, window_bounds = array<i64: 16, 16>}, {pipeline_mode = #tpu.pipeline_mode<synchronous>, transform_indices = @transform_3, window_bounds = array<i64: 16, 1>}, {pipeline_mode = #tpu.pipeline_mode<synchronous>, transform_indices = @transform_4, window_bounds = array<i64: 16, 1>}, {pipeline_mode = #tpu.pipeline_mode<synchronous>, transform_indices = @transform_5, window_bounds = array<i64: 1, 1>}, {transform_indices = @transform_6, window_bounds = array<i64: 1, 256>}]} {
    %c0 = arith.constant 0 : index
    %c0_0 = arith.constant 0 : index
    %0 = vector.load %arg1[%c0, %c0_0] : memref<1x256xbf16, #tpu.memory_space<vmem>>, vector<1x256xbf16>
    %c0_1 = arith.constant 0 : index
    %c0_2 = arith.constant 0 : index
    %1 = vector.load %arg8[%c0_1, %c0_2] : memref<1x384xbf16, #tpu.memory_space<vmem>>, vector<1x256xbf16>
    tpu.vector_store %arg8[%c0_1, %c0_2], %0 {strides = array<i32>} : memref<1x384xbf16, #tpu.memory_space<vmem>>, vector<1x256xbf16>,
    %c0_3 = arith.constant 0 : index
    %c0_4 = arith.constant 0 : index
    %2 = vector.load %arg2[%c0_3, %c0_4] : memref<1x128xbf16, #tpu.memory_space<vmem>>, vector<1x128xbf16>
    %c0_5 = arith.constant 0 : index
    %c256 = arith.constant 256 : index
    %3 = vector.load %arg8[%c0_5, %c256] : memref<1x384xbf16, #tpu.memory_space<vmem>>, vector<1x128xbf16>
    tpu.vector_store %arg8[%c0_5, %c256], %2 {strides = array<i32>} : memref<1x384xbf16, #tpu.memory_space<vmem>>, vector<1x128xbf16>,
    %c0_6 = arith.constant 0 : index
    %c0_7 = arith.constant 0 : index
    %4 = vector.load %arg8[%c0_6, %c0_7] : memref<1x384xbf16, #tpu.memory_space<vmem>>, vector<1x256xbf16>
    %5 = arith.extf %4 : vector<1x256xbf16> to vector<1x256xf32>
    %c0_8 = arith.constant 0 : index
    %c0_9 = arith.constant 0 : index
    %6 = vector.load %arg9[%c0_8, %c0_9] : memref<16x256xf32, #tpu.memory_space<vmem>>, vector<1x256xf32>
    tpu.vector_store %arg9[%c0_8, %c0_9], %5 {strides = array<i32>} : memref<16x256xf32, #tpu.memory_space<vmem>>, vector<1x256xf32>,
    %c0_10 = arith.constant 0 : index
    %c1 = arith.constant 1 : index
    %7 = vector.load %arg8[%c0_10, %c1] : memref<1x384xbf16, #tpu.memory_space<vmem>>, vector<1x256xbf16>
    %8 = arith.extf %7 : vector<1x256xbf16> to vector<1x256xf32>
    %c1_11 = arith.constant 1 : index
    %c0_12 = arith.constant 0 : index
    %9 = vector.load %arg9[%c1_11, %c0_12] : memref<16x256xf32, #tpu.memory_space<vmem>>, vector<1x256xf32>
    tpu.vector_store %arg9[%c1_11, %c0_12], %8 {strides = array<i32>} : memref<16x256xf32, #tpu.memory_space<vmem>>, vector<1x256xf32>,
    %c0_13 = arith.constant 0 : index
    %c2 = arith.constant 2 : index
    %10 = vector.load %arg8[%c0_13, %c2] : memref<1x384xbf16, #tpu.memory_space<vmem>>, vector<1x256xbf16>
    %11 = arith.extf %10 : vector<1x256xbf16> to vector<1x256xf32>
    %c2_14 = arith.constant 2 : index
    %c0_15 = arith.constant 0 : index
    %12 = vector.load %arg9[%c2_14, %c0_15] : memref<16x256xf32, #tpu.memory_space<vmem>>, vector<1x256xf32>
    tpu.vector_store %arg9[%c2_14, %c0_15], %11 {strides = array<i32>} : memref<16x256xf32, #tpu.memory_space<vmem>>, vector<1x256xf32>,
    %c0_16 = arith.constant 0 : index
    %c18 = arith.constant 18 : index
    %13 = vector.load %arg8[%c0_16, %c18] : memref<1x384xbf16, #tpu.memory_space<vmem>>, vector<1x256xbf16>
    %14 = arith.extf %13 : vector<1x256xbf16> to vector<1x256xf32>
    %c3 = arith.constant 3 : index
    %c0_17 = arith.constant 0 : index
    %15 = vector.load %arg9[%c3, %c0_17] : memref<16x256xf32, #tpu.memory_space<vmem>>, vector<1x256xf32>
    tpu.vector_store %arg9[%c3, %c0_17], %14 {strides = array<i32>} : memref<16x256xf32, #tpu.memory_space<vmem>>, vector<1x256xf32>,
    %c0_18 = arith.constant 0 : index
    %c19 = arith.constant 19 : index
    %16 = vector.load %arg8[%c0_18, %c19] : memref<1x384xbf16, #tpu.memory_space<vmem>>, vector<1x256xbf16>
    %17 = arith.extf %16 : vector<1x256xbf16> to vector<1x256xf32>
    %c4 = arith.constant 4 : index
    %c0_19 = arith.constant 0 : index
    %18 = vector.load %arg9[%c4, %c0_19] : memref<16x256xf32, #tpu.memory_space<vmem>>, vector<1x256xf32>
    tpu.vector_store %arg9[%c4, %c0_19], %17 {strides = array<i32>} : memref<16x256xf32, #tpu.memory_space<vmem>>, vector<1x256xf32>,
    %c0_20 = arith.constant 0 : index
    %c20 = arith.constant 20 : index
    %19 = vector.load %arg8[%c0_20, %c20] : memref<1x384xbf16, #tpu.memory_space<vmem>>, vector<1x256xbf16>
    %20 = arith.extf %19 : vector<1x256xbf16> to vector<1x256xf32>
    %c5 = arith.constant 5 : index
    %c0_21 = arith.constant 0 : index
    %21 = vector.load %arg9[%c5, %c0_21] : memref<16x256xf32, #tpu.memory_space<vmem>>, vector<1x256xf32>
    tpu.vector_store %arg9[%c5, %c0_21], %20 {strides = array<i32>} : memref<16x256xf32, #tpu.memory_space<vmem>>, vector<1x256xf32>,
    %c0_22 = arith.constant 0 : index
    %c36 = arith.constant 36 : index
    %22 = vector.load %arg8[%c0_22, %c36] : memref<1x384xbf16, #tpu.memory_space<vmem>>, vector<1x256xbf16>
    %23 = arith.extf %22 : vector<1x256xbf16> to vector<1x256xf32>
    %c6 = arith.constant 6 : index
    %c0_23 = arith.constant 0 : index
    %24 = vector.load %arg9[%c6, %c0_23] : memref<16x256xf32, #tpu.memory_space<vmem>>, vector<1x256xf32>
    tpu.vector_store %arg9[%c6, %c0_23], %23 {strides = array<i32>} : memref<16x256xf32, #tpu.memory_space<vmem>>, vector<1x256xf32>,
    %c0_24 = arith.constant 0 : index
    %c37 = arith.constant 37 : index
    %25 = vector.load %arg8[%c0_24, %c37] : memref<1x384xbf16, #tpu.memory_space<vmem>>, vector<1x256xbf16>
    %26 = arith.extf %25 : vector<1x256xbf16> to vector<1x256xf32>
    %c7 = arith.constant 7 : index
    %c0_25 = arith.constant 0 : index
    %27 = vector.load %arg9[%c7, %c0_25] : memref<16x256xf32, #tpu.memory_space<vmem>>, vector<1x256xf32>
    tpu.vector_store %arg9[%c7, %c0_25], %26 {strides = array<i32>} : memref<16x256xf32, #tpu.memory_space<vmem>>, vector<1x256xf32>,
    %c0_26 = arith.constant 0 : index
    %c38 = arith.constant 38 : index
    %28 = vector.load %arg8[%c0_26, %c38] : memref<1x384xbf16, #tpu.memory_space<vmem>>, vector<1x256xbf16>
    %29 = arith.extf %28 : vector<1x256xbf16> to vector<1x256xf32>
    %c8 = arith.constant 8 : index
    %c0_27 = arith.constant 0 : index
    %30 = vector.load %arg9[%c8, %c0_27] : memref<16x256xf32, #tpu.memory_space<vmem>>, vector<1x256xf32>
    tpu.vector_store %arg9[%c8, %c0_27], %29 {strides = array<i32>} : memref<16x256xf32, #tpu.memory_space<vmem>>, vector<1x256xf32>,
    %cst = arith.constant 0.000000e+00 : f32
    %31 = vector.broadcast %cst : f32 to vector<7x256xf32>
    %c9 = arith.constant 9 : index
    %c0_28 = arith.constant 0 : index
    %32 = vector.load %arg9[%c9, %c0_28] : memref<16x256xf32, #tpu.memory_space<vmem>>, vector<7x256xf32>
    tpu.vector_store %arg9[%c9, %c0_28], %31 {strides = array<i32>} : memref<16x256xf32, #tpu.memory_space<vmem>>, vector<7x256xf32>,
    %c0_29 = arith.constant 0 : index
    %c0_30 = arith.constant 0 : index
    %33 = vector.load %arg3[%c0_29, %c0_30] : memref<16x16xbf16, #tpu.memory_space<vmem>>, vector<16x16xbf16>
    %c0_31 = arith.constant 0 : index
    %c0_32 = arith.constant 0 : index
    %34 = vector.load %arg9[%c0_31, %c0_32] : memref<16x256xf32, #tpu.memory_space<vmem>>, vector<16x256xf32>
    %35 = arith.truncf %34 : vector<16x256xf32> to vector<16x256xbf16>
    %cst_33 = arith.constant dense<0.000000e+00> : vector<16x256xf32>
    %36 = tpu.matmul %33, %35, %cst_33 {dimension_numbers = #tpu.dot_dimension_numbers<[1], [0], [0], [1], [0, 0, 1, 1], [], []>} : vector<16x16xbf16>, vector<16x256xbf16>, vector<16x256xf32> -> vector<16x256xf32>
    %c0_34 = arith.constant 0 : index
    %c0_35 = arith.constant 0 : index
    %37 = vector.load %arg4[%c0_34, %c0_35] : memref<16x1xf32, #tpu.memory_space<vmem>>, vector<16x1xf32>
    %38 = vector.broadcast %37 : vector<16x1xf32> to vector<16x256xf32>
    %39 = arith.addf %36, %38 : vector<16x256xf32>
    %cst_36 = arith.constant 0.000000e+00 : f32
    %40 = vector.broadcast %cst_36 : f32 to vector<16x256xf32>
    %41 = arith.maximumf %39, %40 : vector<16x256xf32>
    %c0_37 = arith.constant 0 : index
    %c0_38 = arith.constant 0 : index
    %42 = vector.load %arg5[%c0_37, %c0_38] : memref<16x1xf32, #tpu.memory_space<vmem>>, vector<16x1xf32>
    %43 = vector.broadcast %42 : vector<16x1xf32> to vector<16x256xf32>
    %44 = arith.mulf %41, %43 : vector<16x256xf32>
    %cst_39 = arith.constant dense<0.000000e+00> : vector<256xf32>
    %45 = vector.multi_reduction <add>, %44, %cst_39 [0] : vector<16x256xf32> to vector<256xf32>
    %46 = vector.shape_cast %45 : vector<256xf32> to vector<1x256xf32>
    %c0_40 = arith.constant 0 : index
    %c0_41 = arith.constant 0 : index
    %47 = vector.load %arg6[%c0_40, %c0_41] : memref<1x1xf32, #tpu.memory_space<vmem>>, vector<1x1xf32>
    %48 = vector.broadcast %47 : vector<1x1xf32> to vector<1x256xf32>
    %49 = arith.addf %46, %48 : vector<1x256xf32>
    %50 = arith.negf %49 : vector<1x256xf32>
    %51 = math.exp %50 : vector<1x256xf32>
    %cst_42 = arith.constant 1.000000e+00 : f32
    %52 = vector.broadcast %cst_42 : f32 to vector<1x256xf32>
    %53 = arith.addf %52, %51 : vector<1x256xf32>
    %54 = arith.divf %52, %53 : vector<1x256xf32>
    %c0_43 = arith.constant 0 : index
    %c0_44 = arith.constant 0 : index
    %55 = vector.load %arg7[%c0_43, %c0_44] : memref<1x256xf32, #tpu.memory_space<vmem>>, vector<1x256xf32>
    tpu.vector_store %arg7[%c0_43, %c0_44], %54 {strides = array<i32>} : memref<1x256xf32, #tpu.memory_space<vmem>>, vector<1x256xf32>,
    return
  }
  func.func @transform_0(%arg0: i32) -> (i32, i32) {
    %c0_i32 = arith.constant 0 : i32
    %c0_i32_0 = arith.constant 0 : i32
    return %c0_i32, %arg0 : i32, i32
  }
  func.func @transform_1(%arg0: i32) -> (i32, i32) {
    %c1_i32 = arith.constant 1 : i32
    %0 = arith.addi %arg0, %c1_i32 : i32
    %c2_i32 = arith.constant 2 : i32
    %1 = arith.muli %0, %c2_i32 : i32
    %c0_i32 = arith.constant 0 : i32
    %c0_i32_0 = arith.constant 0 : i32
    return %c0_i32, %1 : i32, i32
  }
  func.func @transform_2(%arg0: i32) -> (i32, i32) {
    %c0_i32 = arith.constant 0 : i32
    %c0_i32_0 = arith.constant 0 : i32
    %c0_i32_1 = arith.constant 0 : i32
    return %c0_i32, %c0_i32_0 : i32, i32
  }
  func.func @transform_3(%arg0: i32) -> (i32, i32) {
    %c0_i32 = arith.constant 0 : i32
    %c0_i32_0 = arith.constant 0 : i32
    %c0_i32_1 = arith.constant 0 : i32
    return %c0_i32, %c0_i32_0 : i32, i32
  }
  func.func @transform_4(%arg0: i32) -> (i32, i32) {
    %c0_i32 = arith.constant 0 : i32
    %c0_i32_0 = arith.constant 0 : i32
    %c0_i32_1 = arith.constant 0 : i32
    return %c0_i32, %c0_i32_0 : i32, i32
  }
  func.func @transform_5(%arg0: i32) -> (i32, i32) {
    %c0_i32 = arith.constant 0 : i32
    %c0_i32_0 = arith.constant 0 : i32
    %c0_i32_1 = arith.constant 0 : i32
    return %c0_i32, %c0_i32_0 : i32, i32
  }
  func.func @transform_6(%arg0: i32) -> (i32, i32) {
    %c0_i32 = arith.constant 0 : i32
    %c0_i32_0 = arith.constant 0 : i32
    return %c0_i32, %arg0 : i32, i32
  }
}

</mosaic_0001>

<bundles_post_ra>
// kernel: tpu_custom_call.1
= control target key start
LH: loop header
LB: loop body
LE: loop exit
PB: predicated region body
PF: predicated region fallthrough
CT: control target
= control target key end

     0   :  { %s1082_s0 = inlined_call_operand.vmem [shape: bf16[1,1152], index: 0, kind: input, shape index: {}]   ;;  %s1083_s1 = inlined_call_operand.vmem [shape: bf16[1,1152], index: 1, kind: input, shape index: {}]   ;;  %s1084_s2 = inlined_call_operand.vmem [shape: bf16[16,16], index: 2, kind: input, shape index: {}]   ;;  %s1085_s3 = inlined_call_operand.vmem [shape: f32[16,1], index: 3, kind: input, shape index: {}]   ;;  %s1086_s4 = inlined_call_operand.vmem [shape: f32[16,1], index: 4, kind: input, shape index: {}]   ;;  %s1087_s5 = inlined_call_operand.<no memory space> [shape: f32[1,1], index: 5, kind: input, shape index: {}]   ;;  %s1088_s6 = inlined_call_operand.hbm [shape: f32[1,1024], index: 6, kind: output, shape index: {}]  }
   0x1   :  { %v11_v0 = vstv %s1087_s5 }
   0x2   :  { %12 = vst [vmem:[#allocation4] sm:$0x1] %v11_v0 }
   0x3   :  { %13 = vsyncpa [#allocation6], 0 }
   0x4   :  { %15 = vsyncpa [#allocation6 + $0x1], 0  ;;  %s916_s23 = smov 0   ;;  %s918_s24 = smov 0  }
   0x5   :  { %s920_s25 = smov 0   ;;  %s922_s26 = smov 0  }
   0x6 LB: > { %s937_s5 = sadd.s32 4294967295, %s864_s26   ;;  %s716_s27 = sadd.s32 4294967294, %s864_s26   ;;  %s864_s26 = sphi %s922_s26, %s1098_s26   ;;  %s860_s25 = sphi %s920_s25, %s1097_s25   ;;  %s856_s24 = sphi %s918_s24, %s1096_s24   ;;  %s852_s23 = sphi %s916_s23, %s1095_s23  }
   0x7   : > { %s941_s28 = sadd.s32 1, %s864_s26   ;;  %s168_s29 = sadd.s32 1, %s860_s25 }
   0x8   : > { %s165_s30 = ssub.s32 %s864_s26, %s941_s28  ;;  %p178_p0 = scmp.ne.s32.totalorder %s860_s25, %s856_s24 }
   0x9   : > { %p166_p1 = scmp.eq.s32.totalorder %s165_s30, 0  ;;  %p179_p2 = scmp.eq.s32.totalorder %s937_s5, 3 }
   0xa   : > { %p184_p3 = scmp.ne.s32.totalorder %s856_s24, %s852_s23  ;;  %p185_p4 = scmp.eq.s32.totalorder %s716_s27, 3 }
   0xb   : > { %s952_s7 = scalar_select %p166_p1, %s860_s25, %s168_s29  }
   0xc   : > { %p954_p5 = por %p179_p2, %p178_p0  ;;  %p958_p6 = por %p185_p4, %p184_p3 }
   0xd   : > { %p721_p7 = scmp.ge.s32.totalorder %s864_s26, 1  ;;  %p241_p8 = scmp.lt.s32.totalorder %s864_s26, 5 }
   0xf   : > { %p242_p9 = pnand %p721_p7, %p241_p8 }
  0x10   : > { %s723_s10 = sshll.u32 (!%p242_p9), %s937_s5, 1  ;;  %vm302_vm0 = vcmask (!%p242_p9), 1040384   ;;  %vm303_vm1 = vsmask.f32 (!%p242_p9), 256  ;;  %vm305_vm2 = vcmask (!%p242_p9), 1041409   ;;  %v322_v9 = vlaneseq (!%p242_p9)  ;;  %s867_s18 = smov (!%p242_p9), 110  }
  0x11   : > { %245 = sbr.rel (%p242_p9) target bundleno = 469 (0x1d5), region = 44  ;;  %p284_p10 = scmp.lt.s32.totalorder (!%p242_p9), %s723_s10, 8  ;;  %vm965_vm3 = vmand (!%p242_p9), %vm302_vm0, %vm303_vm1  ;;  %vm306_vm4 = vsmask.f32 (!%p242_p9), 1280  ;;  %v309_v2 = vld [vmem:[#allocation2] sm:$0x3] (!%p242_p9) }
  0x12   : > { %s739_s11 = sadd.s32 (!%p242_p9), 2, %s723_s10  ;;  %vm307_vm5 = vmand (!%p242_p9), %vm305_vm2, %vm306_vm4  ;;  %v313_v3 = vld [vmem:[#allocation2 + $0x2] sm:$0x1] (!%p242_p9)  ;;  %v866_v7 = vmov (!%p242_p9), 1966171168   ;;  %v979_v12 = vshrl.u32 (!%p242_p9), %v322_v9, 7 }
  0x13   : > { %p294_p11 = scmp.lt.s32.totalorder (!%p242_p9), %s739_s11, 8  ;;  %vm308_vm6 = vmor (!%p242_p9), %vm307_vm5, %vm965_vm3  ;;  %v320_v8 = vunpack.c.l.s4 (!%p242_p9), %v866_v7  ;;  %s868_s19 = smov (!%p242_p9), 127   ;;  %v869_v35 = vmov (!%p242_p9), 0.0   ;;  %vm989_vm7 = vcmp.lt.s32.totalorder (!%p242_p9), %v322_v9, 256  ;;  %v876_v43 = vmov (!%p242_p9), 0   ;;  %v496_v44 = vld [vmem:[%s1085_s3 + $0x8] sm:$0xff] (!%p242_p9) }
  0x14   : > { %486 = vst [vmem:[#allocation3 + $0x18] sm:$0xfe] (!%p242_p9), %v869_v35  ;;  %485 = vst [vmem:[#allocation3 + $0x10] sm:$0xfe] (!%p242_p9), %v869_v35  ;;  %s870_s20 = smov (!%p242_p9), 109   ;;  %s871_s21 = smov (!%p242_p9), 126   ;;  %548 = vmatprep.mubr.bf16.mxu0 (!%p242_p9), %v876_v43  ;;  %792 = vset.pattern.permute.xlu1 (!%p242_p9), %v876_v43 }
  0x15   : > { %v321_v11 = vunpack.c.0.s8 (!%p242_p9), %v320_v8  ;;  %s872_s22 = smov (!%p242_p9), 92   ;;  %s873_s27 = smov (!%p242_p9), 108   ;;  %791 = vset.pattern.permute.xlu0 (!%p242_p9), %v876_v43  ;;  %v495_v45 = vld [vmem:[%s1085_s3] sm:$0xff] (!%p242_p9)  ;;  %v564_v47 = vld [vmem:[%s1086_s4 + $0x8] sm:$0xff] (!%p242_p9)  ;;  %vm384_vm8 = vcmask (!%p242_p9), 900096   ;;  %vm346_vm9 = vcmask (!%p242_p9), 1039360  }
  0x16   : > { %s874_s29 = smov (!%p242_p9), 90   ;;  %s875_s30 = smov (!%p242_p9), 91   ;;  %v563_v46 = vld [vmem:[%s1086_s4] sm:$0xff] (!%p242_p9)  ;;  %vm403_vm10 = vcmask (!%p242_p9), 891904   ;;  %vm365_vm11 = vcmask (!%p242_p9), 1031168   ;;  %vm441_vm12 = vcmask (!%p242_p9), 752640  }
  0x17   : > { %v982_v13 = vsub.s32 (!%p242_p9), %v321_v11, %v979_v12  ;;  %v593_v48 = vld [vmem:[#allocation4] sm:$0x1] (!%p242_p9)  ;;  %vm422_vm13 = vcmask (!%p242_p9), 883712   ;;  %vm479_vm14 = vcmask (!%p242_p9), 736256   ;;  %vm460_vm15 = vcmask (!%p242_p9), 744448   ;;  %s877_s13 = smov (!%p242_p9), [#allocation5]  }
  0x18   : > { %s1100_s10 = smov (!%p284_p10, %s723_s10), 8  ;;  %s1102_s11 = smov (!%p294_p11, %s739_s11), 8  ;;  %vm512_vm0 = vcmask 130048  }
  0x19   : > { %s286_s14 = scalar_lea.vmem %s1082_s0, %s1100_s10  ;;  %s296_s17 = scalar_lea.vmem %s1083_s1, %s1102_s11 }
  0x1a   : > { %v301_v4 = vld [vmem:[%s286_s14] sm:$0x3]  ;;  %s806_s14 = sshll.u32 %s877_s13, 4  ;;  %s807_s14 = int_to_ptr.vmem [resolvable:$false] %s806_s14 }
  0x1b   : > { %v310_v5 = vsel %vm308_vm6, %v301_v4, %v309_v2  ;;  %v312_v6 = vld [vmem:[%s296_s17] sm:$0x1]  ;;  %s808_s15 = scalar_lea.vmem %s807_s14, 64 }
  0x1c   : > { %311 = vst [vmem:[#allocation2] sm:$0x3] %v310_v5  ;;  %v314_v10 = vsel %vm965_vm3, %v312_v6, %v313_v3 }
  0x1d   : > { %315 = vst [vmem:[#allocation2 + $0x2] sm:$0x1] %v314_v10 }
  0x23   : > { %v316_v26 = vld [vmem:[#allocation2] sm:$0x3] }
  0x24   : > { %v371_v14 = vld [vmem:[#allocation2] sm:$0x7]  ;;  %v317_v31 = vunpack.c.l.bf16 %v316_v26 }
  0x25   : > { %v333_v15 = vld [vmem:[#allocation2] sm:$0x7]  ;;  %v372_v17 = vunpack.c.l.bf16 %v371_v14 }
  0x26   : > { %v390_v16 = vld [vmem:[#allocation2] sm:$0x7]  ;;  %v334_v18 = vunpack.c.l.bf16 %v333_v15  ;;  %v325_v34 = vrot.slane %v317_v31, %v982_v13 }
  0x27   : > { %v391_v19 = vunpack.c.l.bf16 %v390_v16  ;;  %v352_v20 = vld [vmem:[#allocation2] sm:$0x7]  ;;  %v380_v24 = vrot.slane %v372_v17, %v982_v13 }
  0x28   : > { %v428_v21 = vld [vmem:[#allocation2] sm:$0x7]  ;;  %v353_v22 = vunpack.c.l.bf16 %v352_v20  ;;  %v342_v25 = vrot.slane %v334_v18, %v982_v13  ;;  %331 = vst.msk [vmem:[#allocation3] ss:$8 sm:$0x3] %vm989_vm7, %v325_v34 }
  0x29   : > { %v409_v23 = vld [vmem:[#allocation2] sm:$0x7]  ;;  %v429_v27 = vunpack.c.l.bf16 %v428_v21  ;;  %381 = vrot.lane.b32.xlu1 %v380_v24, %s867_s18  ;;  %v399_v28 = vrot.slane %v391_v19, %v982_v13 }
  0x2a   : > { %343 = vrot.lane.b32.xlu0 %v342_v25, %s868_s19  ;;  %v361_v29 = vrot.slane %v353_v22, %v982_v13  ;;  %v410_v30 = vunpack.c.l.bf16 %v409_v23  ;;  %v466_v32 = vld [vmem:[#allocation2] sm:$0x7] }
  0x2b   : > { %v447_v33 = vld [vmem:[#allocation2] sm:$0x7]  ;;  %v437_v37 = vrot.slane %v429_v27, %v982_v13  ;;  %v467_v39 = vunpack.c.l.bf16 %v466_v32 }
  0x2c   : > { %v418_v38 = vrot.slane %v410_v30, %v982_v13  ;;  %v448_v40 = vunpack.c.l.bf16 %v447_v33  ;;  %v793_v17 = vld [vmem:[%s1084_s2] sm:$0xff]  }
  0x2d   : > { %400 = vrot.lane.b32.xlu1 %v399_v28, %s870_s20  ;;  %v475_v41 = vrot.slane %v467_v39, %v982_v13  ;;  %s276_s20 = sand.u32 1, %s856_s24  }
  0x2e   : > { %362 = vrot.lane.b32.xlu0 %v361_v29, %s871_s21  ;;  %v456_v42 = vrot.slane %v448_v40, %v982_v13  ;;  %s722_s21 = sshll.u32 %s276_s20, 1 }
  0x31   : > { %438 = vrot.lane.b32.xlu1 %v437_v37, %s872_s22  ;;  %s740_s22 = sshll.u32 %s937_s5, 5  ;;  %s637_s5 = scalar_lea.sflag [#allocation6], %s276_s20 }
  0x32   : > { %419 = vrot.lane.b32.xlu0 %v418_v38, %s873_s27  ;;  %s278_s27 = scalar_lea.vmem [#allocation5], %s722_s21  ;;  %s1038_s11 = scalar_lea.hbm %s1088_s6, %s740_s22 }
  0x35   : > { %476 = vrot.lane.b32.xlu1 %v475_v41, %s874_s29  ;;  %s651_s29 = sshll.u32 %s278_s27, 4  ;;  %s1040_s29 = int_to_ptr.vmem [resolvable:$true] %s651_s29 }
  0x36   : > { %457 = vrot.lane.b32.xlu0 %v456_v42, %s875_s30  ;;  %s802_s12 = scalar_lea.vmem %s1040_s29, 32  ;;  %p809_p1 = scmp.lt.s32.totalorder %s1040_s29, %s807_s14 }
  0x37   : > { %p803_p12 = scmp.ne.s32.totalorder %s1040_s29, %s802_s12  ;;  %p810_p2 = scmp.lt.s32.totalorder %s808_s15, %s802_s12 }
  0x39   : > { %504 = vperm.xlu1 %792, %v496_v44   ;;  %p804_p13 = pnand %p803_p12, %p954_p5  ;;  %p811_p3 = por %p810_p2, %p809_p1 }
  0x3a   : > { %499 = vperm.xlu0 %791, %v495_v45  }
  0x3b   : > { %p805_p0 = pneg %p804_p13 }
  0x3d   : > { %567 = vperm.xlu1 %792, %v563_v46   ;;  %p812_p4 = pnand %p811_p3, %p805_p0 }
  0x3e   : > { %572 = vperm.xlu0 %791, %v564_v47   ;;  %v601_v47 = vsub.s32 0, %v979_v12 }
  0x41   : > { %596 = vperm.xlu1 %792, %v593_v48  }
  0x9b   : > { %v382_v49 = vpop.permute.xlu1 %381 }
  0x9c   : > { %v344_v50 = vpop.permute.xlu0 %343  ;;  %v383_v51 = vrot.slane %v382_v49, 1 }
  0x9d   : > { %v345_v52 = vrot.slane %v344_v50, 1 }
  0x9e   : > { %v385_v53 = vsel %vm384_vm8, %v382_v49, %v383_v51 }
  0x9f   : > { %v347_v54 = vsel %vm346_vm9, %v344_v50, %v345_v52  ;;  %388 = vst.msk [vmem:[#allocation3 + $0x3] ss:$8 sm:$0x3] %vm989_vm7, %v385_v53  ;;  %v401_v55 = vpop.permute.xlu1 %400 }
  0xa0   : > { %350 = vst.msk [vmem:[#allocation3 + $0x1] ss:$8 sm:$0x3] %vm989_vm7, %v347_v54  ;;  %v363_v56 = vpop.permute.xlu0 %362  ;;  %v402_v57 = vrot.slane %v401_v55, 1 }
  0xa1   : > { %v364_v58 = vrot.slane %v363_v56, 1 }
  0xa2   : > { %v404_v59 = vsel %vm403_vm10, %v401_v55, %v402_v57 }
  0xa3   : > { %v366_v60 = vsel %vm365_vm11, %v363_v56, %v364_v58  ;;  %407 = vst.msk [vmem:[#allocation3 + $0x4] ss:$8 sm:$0x3] %vm989_vm7, %v404_v59  ;;  %v439_v61 = vpop.permute.xlu1 %438 }
  0xa4   : > { %369 = vst.msk [vmem:[#allocation3 + $0x2] ss:$8 sm:$0x3] %vm989_vm7, %v366_v60  ;;  %v420_v62 = vpop.permute.xlu0 %419  ;;  %v440_v63 = vrot.slane %v439_v61, 1 }
  0xa5   : > { %v421_v0 = vrot.slane %v420_v62, 1 }
  0xa6   : > { %v442_v1 = vsel %vm441_vm12, %v439_v61, %v440_v63 }
  0xa7   : > { %v423_v2 = vsel %vm422_vm13, %v420_v62, %v421_v0  ;;  %445 = vst.msk [vmem:[#allocation3 + $0x6] ss:$8 sm:$0x3] %vm989_vm7, %v442_v1  ;;  %v477_v3 = vpop.permute.xlu1 %476 }
  0xa8   : > { %426 = vst.msk [vmem:[#allocation3 + $0x5] ss:$8 sm:$0x3] %vm989_vm7, %v423_v2  ;;  %v458_v4 = vpop.permute.xlu0 %457  ;;  %v478_v5 = vrot.slane %v477_v3, 1 }
  0xa9   : > { %v459_v6 = vrot.slane %v458_v4, 1 }
  0xaa   : > { %v480_v7 = vsel %vm479_vm14, %v477_v3, %v478_v5 }
  0xab   : > { %v461_v8 = vsel %vm460_vm15, %v458_v4, %v459_v6  ;;  %483 = vst.msk [vmem:[#allocation3 + $0x10] ss:$8 sm:$0x3] %vm989_vm7, %v480_v7 }
  0xac   : > { %464 = vst.msk [vmem:[#allocation3 + $0x7] ss:$8 sm:$0x3] %vm989_vm7, %v461_v8 }
  0xb2   : > { %v492_v10 = vld [vmem:[#allocation3 + $0x18] sm:$0xff]  ;;  %v491_v15 = vld [vmem:[#allocation3 + $0x10] sm:$0xff] }
  0xb3   : > { %v490_v9 = vld [vmem:[#allocation3 + $0x8] sm:$0xff]  ;;  %v489_v11 = vld [vmem:[#allocation3] sm:$0xff] }
  0xb4   : > { %v494_v14 = vpack.c.bf16 %v492_v10, %v490_v9  ;;  %v493_v16 = vpack.c.bf16 %v491_v15, %v489_v11 }
  0xb6   : > { %516 = vmatprep.subr.bf16.mxu0 %v494_v14 }
  0xb7   : > { %517 = vmatpush1.bf16.msra.mxu0 %v493_v16 }
  0xb8   : > { %v505_v19 = vpop.permute.xlu1 %504 }
  0xb9   : > { %v500_v18 = vpop.permute.xlu0 %499 }
  0xba   : > { %726 = vmatmul.mubr.msk.bf16.vlgmr.msra.gmra.mrb[0].mxu0 %vm512_vm0, %v793_v17 }
  0xbc   : > { %v568_v31 = vpop.permute.xlu1 %567 }
  0xbd   : > { %v573_v32 = vpop.permute.xlu0 %572 }
  0xc0   : > { %v597_v49 = vpop.permute.xlu1 %596 }
  0xc1   : > { %v602_v53 = vrot.slane %v597_v49, %v601_v47 }
 0x18d   : > { %v550_v20 = vpop.f32.mrb[0].mxu0 }
 0x18e   : > { %v551_v21 = vadd.f32 %v550_v20, %v500_v18  ;;  %v552_v22 = vpop.f32.mrb[1].mxu0 }
 0x18f   : > { %v553_v23 = vadd.f32 %v552_v22, %v500_v18  ;;  %v554_v24 = vpop.f32.mrb[2].mxu0 }
 0x190   : > { %v559_v25 = vmax.f32 %v551_v21, 0.0  ;;  %v555_v26 = vadd.f32 %v554_v24, %v505_v19  ;;  %v556_v27 = vpop.f32.mrb[3].mxu0 }
 0x191   : > { %v560_v28 = vmax.f32 %v553_v23, 0.0  ;;  %v557_v29 = vadd.f32 %v556_v27, %v505_v19 }
 0x192   : > { %v561_v30 = vmax.f32 %v555_v26, 0.0  ;;  %v575_v34 = vmul.f32 %v568_v31, %v559_v25 }
 0x193   : > { %v562_v33 = vmax.f32 %v557_v29, 0.0  ;;  %v576_v37 = vmul.f32 %v568_v31, %v560_v28 }
 0x194   : > { %v577_v35 = vmul.f32 %v573_v32, %v561_v30 }
 0x195   : > { %v578_v38 = vmul.f32 %v573_v32, %v562_v33 }
 0x196   : > { %v579_v39 = vadd.f32 %v577_v35, %v575_v34 }
 0x197   : > { %v586_v40 = vadd.f32 %v578_v38, %v576_v37 }
 0x198   : > { %v580_v41 = vrot.slane %v579_v39, 4 }
 0x199   : > { %v587_v42 = vrot.slane %v586_v40, 4 }
 0x19a   : > { %v581_v43 = vadd.f32 %v580_v41, %v579_v39 }
 0x19b   : > { %v588_v44 = vadd.f32 %v587_v42, %v586_v40 }
 0x19c   : > { %v582_v45 = vrot.slane %v581_v43, 2 }
 0x19d   : > { %v589_v46 = vrot.slane %v588_v44, 2 }
 0x19e   : > { %v583_v48 = vadd.f32 %v582_v45, %v581_v43 }
 0x19f   : > { %v590_v50 = vadd.f32 %v589_v46, %v588_v44 }
 0x1a0   : > { %v584_v51 = vrot.slane %v583_v48, 1 }
 0x1a1   : > { %v591_v52 = vrot.slane %v590_v50, 1 }
 0x1a2   : > { %v585_v54 = vadd.f32 %v584_v51, %v583_v48 }
 0x1a3   : > { %v592_v55 = vadd.f32 %v591_v52, %v590_v50 }
 0x1a4   : > { %v603_v56 = vadd.f32 %v602_v53, %v585_v54 }
 0x1a5   : > { %v604_v57 = vadd.f32 %v602_v53, %v592_v55 }
 0x1a6   : > { %v727_v58 = vmul.f32 -1.442695, %v603_v56 }
 0x1a7   : > { %v728_v59 = vmul.f32 -1.442695, %v604_v57 }
 0x1a8   : > { %794 = vpow2.f32 %v727_v58 }
 0x1a9   : > { %796 = vpow2.f32 %v728_v59 }
 0x1b2   : > { %v795_v60 = vpop.eup %794 }
 0x1b3   : > { %v797_v61 = vpop.eup %796  ;;  %v611_v62 = vadd.f32 1.0, %v795_v60 }
 0x1b4   : > { %v612_v12 = vadd.f32 1.0, %v797_v61 }
 0x1b5   : > { %798 = vrcp.f32 %v611_v62 }
 0x1b6   : > { %800 = vrcp.f32 %v612_v12 }
 0x1bf   : > { %v799_v63 = vpop.eup %798 }
 0x1c0   : > { %v801_v0 = vpop.eup %800 }
 0x1c1   : > { %v619_v1 = vcombine.low %v799_v63, %v801_v0 }
 0x1c3   : > { %v626_v2 = vrot.slane %v619_v1, %v982_v13 }
 0x1c5   : > { %v633_v3 = vrot.slane %v626_v2, %v982_v13 }
 0x1c7   : > { %635 = vst.msk [vmem:[%s278_s27] sm:$0x3] %vm989_vm7, %v633_v3 }
 0x1c8   : > { %815 = shalt.err (!%p812_p4)
}
 0x1c9   : > { %s816_s16 = scalar_lea.hbm %s1038_s11, 32  ;;  %s820_s19 = scalar_lea.hbm %s1088_s6, 128 }
 0x1ca   : > { %p817_p7 = scmp.ne.s32.totalorder %s1038_s11, %s816_s16  ;;  %p821_p10 = scmp.lt.u32.totalorder %s1038_s11, %s1088_s6 }
 0x1cb   : > { %p822_p11 = scmp.lt.u32.totalorder %s820_s19, %s816_s16  ;;  %p824_p13 = scmp.lt.u32.totalorder %s816_s16, %s1038_s11 }
 0x1cc   : > { %p818_p8 = pnand %p817_p7, %p954_p5 }
 0x1cd   : > { %p823_p12 = por %p822_p11, %p821_p10 }
 0x1ce   : > { %p819_p9 = pneg %p818_p8 }
 0x1cf   : > { %p825_p0 = por %p824_p13, %p823_p12 }
 0x1d1   : > { %p826_p1 = pnand %p825_p0, %p819_p9 }
 0x1d3   : > { %829 = shalt.err (!%p826_p1)
}
 0x1d4   : > { %741 = dma.vmem_to_hbm [thread:$0]  (%p954_p5), %s1040_s29, 32, %s1038_s11, %s637_s5  }
 0x1d5 PF: > { %p747_p2 = scmp.ge.s32.totalorder %s864_s26, 2  ;;  %s663_s22 = sand.u32 1, %s852_s23  }
 0x1d6   : > { %s664_s27 = scalar_lea.sflag [#allocation6], %s663_s22 }
 0x1d7   : > { %p744_p3 = pnand %p747_p2, %p958_p6 }
 0x1d9   : > { %847 = dma.done.wait (!%p744_p3), %s664_s27, 32  }
 0x1da   : > { %849 = vsyncadd (!%p744_p3), %s664_s27, 4294967264  ;;  %p18_p4 = scmp.ge.s32.totalorder %s941_s28, 6   ;;  %s1095_s23 = smov %s856_s24 }
 0x1db   : > { %s1096_s24 = smov %s860_s25  ;;  %s1097_s25 = smov %s952_s7 }
 0x1dc   : > { %s1098_s26 = smov %s941_s28  ;;  %20 = sbr.rel (!%p18_p4) target bundleno = 6 (0x6), region = 90 }
 0x1e3   :  { %669 = vsyncpa [#allocation6], 1 }
 0x1e4   :  { %671 = vsyncpa [#allocation6 + $0x1], 1 }

</bundles_post_ra>
